<compile_context>
chip_gen: v6e
topology: v6e:2x2x1
jax: 0.10.0
libtpu: 0.0.40
codegen_flags: <defaults>
</compile_context>

<pallas_src>
import jax
import jax.numpy as jnp
from jax.experimental import pallas as pl
from jax.experimental.pallas import tpu as pltpu


def ann_fused_kernel(ids_ref, emb_ref, w1_ref, b1_ref, w2_ref, b2_ref, o_ref):
    """One batch tile: gather (one-hot matmul) + fc1 + tanh + fc2 + tanh."""
    tb, s = ids_ref.shape          # (batch_tile, sent_len)
    vocab, e_dim = emb_ref.shape   # (vocab, emb)
    hp = w1_ref.shape[1]           # padded hidden (multiple of 128)

    ids = ids_ref[...]                                               # (tb, s) int32
    emb = emb_ref[...]                                               # (vocab, e_dim) bf16
    vocab_iota = jax.lax.broadcasted_iota(jnp.int32, (tb, vocab), 1)

    # x @ W1 accumulated slot-by-slot: slot k of each viewed row holds one embedding
    # vector, so  x @ W1 == sum_k  emb[token_k] @ W1[k*E:(k+1)*E, :].
    acc = jnp.zeros((tb, hp), jnp.float32)
    for k in range(s):                                               # static unroll (s small)
        tok = ids[:, k:k + 1]                                        # (tb, 1)
        one_hot = (tok == vocab_iota).astype(emb.dtype)              # (tb, vocab) bf16 0/1
        e_k = jnp.dot(one_hot, emb,                                  # exact row gather
                      preferred_element_type=jnp.float32)            # (tb, e_dim) f32
        acc = acc + jnp.dot(e_k.astype(w1_ref.dtype),
                            w1_ref[k * e_dim:(k + 1) * e_dim, :],
                            preferred_element_type=jnp.float32)       # (tb, hp) f32

    h = jnp.tanh(acc + b1_ref[...])                                  # f32 bias + tanh
    out = jnp.tanh(jnp.dot(h.astype(w2_ref.dtype), w2_ref[...],
                           preferred_element_type=jnp.float32) + b2_ref[...])
    o_ref[...] = out                                                 # lane-dense f32 store


def _round_up(x, m):
    return (x + m - 1) // m * m


def ann_forward(ids, emb_table, w1, b1, w2, b2, *, block_b=128):
    """ids: (sent_len, batch) int32; w1: (sent_len*emb, hid); w2: (hid, class)."""
    sent_len, batch = ids.shape
    vocab, e_dim = emb_table.shape
    k1, hid = w1.shape
    _, class_num = w2.shape
    assert k1 == sent_len * e_dim, "fc1.in_features must equal sent_len * emb_size"

    # torch-faithful view: the flat reinterpret of the (S, B, E) embedding to
    # (B, S*E) means row i / slot k uses token ids.reshape(B, S)[i, k].
    id_mat = ids.reshape(batch, sent_len).astype(jnp.int32)

    # Pad M to a multiple of 8 (and of the batch tile), N dims to multiples of 128.
    bp = _round_up(batch, 8)
    block_b = min(block_b, bp)
    bp = _round_up(bp, block_b)
    hp = _round_up(hid, 128)
    cp = _round_up(class_num, 128)

    id_pad = jnp.zeros((bp, sent_len), jnp.int32).at[:batch].set(id_mat)
    emb_bf = emb_table.astype(jnp.bfloat16)
    w1p = jnp.zeros((k1, hp), jnp.bfloat16).at[:, :hid].set(w1.astype(jnp.bfloat16))
    b1p = jnp.zeros((1, hp), jnp.float32).at[:, :hid].set(b1.reshape(1, hid))
    w2p = jnp.zeros((hp, cp), jnp.bfloat16).at[:hid, :class_num].set(w2.astype(jnp.bfloat16))
    b2p = jnp.zeros((1, cp), jnp.float32).at[:, :class_num].set(b2.reshape(1, class_num))

    grid = (bp // block_b,)
    flops = 2 * bp * (sent_len * vocab * e_dim + k1 * hp + hp * cp)
    bytes_accessed = int(id_pad.size * 4 + emb_bf.size * 2 + w1p.size * 2
                         + w2p.size * 2 + b1p.size * 4 + b2p.size * 4 + bp * cp * 4)

    out = pl.pallas_call(
        ann_fused_kernel,
        out_shape=jax.ShapeDtypeStruct((bp, cp), jnp.float32),
        grid_spec=pltpu.PrefetchScalarGridSpec(
            num_scalar_prefetch=0,
            grid=grid,
            in_specs=[
                pl.BlockSpec((block_b, sent_len), lambda i: (i, 0)),   # ids tile
                pl.BlockSpec((vocab, e_dim), lambda i: (0, 0)),        # emb table (resident)
                pl.BlockSpec((k1, hp), lambda i: (0, 0)),              # w1 (resident)
                pl.BlockSpec((1, hp), lambda i: (0, 0)),               # b1
                pl.BlockSpec((hp, cp), lambda i: (0, 0)),              # w2
                pl.BlockSpec((1, cp), lambda i: (0, 0)),               # b2
            ],
            out_specs=pl.BlockSpec((block_b, cp), lambda i: (i, 0)),
        ),
        compiler_params=pltpu.CompilerParams(
            dimension_semantics=("parallel",),          # shards batch tiles across TCs (v7x)
            vmem_limit_bytes=32 * 1024 * 1024,          # safe within v7x's 64 MiB/TC budget
        ),
        cost_estimate=pl.CostEstimate(
            flops=flops,
            transcendentals=bp * (hp + cp),
            bytes_accessed=bytes_accessed,
        ),
    )(id_pad, emb_bf, w1p, b1p, w2p, b2p)

    return out[:batch, :class_num]


def ann_reference(ids, emb_table, w1, b1, w2, b2):
    """Pure-JAX reference mirroring the torch forward with the same bf16 operand casts."""
    bf = jnp.bfloat16
    e = jnp.take(emb_table.astype(bf), ids, axis=0)            # (S, B, E)
    s, b, e_dim = e.shape
    x = e.reshape(b, s * e_dim)                                # torch .view semantics
    h = jnp.tanh(jnp.dot(x, w1.astype(bf), preferred_element_type=jnp.float32) + b1)
    return jnp.tanh(jnp.dot(h.astype(bf), w2.astype(bf),
                            preferred_element_type=jnp.float32) + b2)


if __name__ == "__main__":
    # Small shapes consistent with the module; the torch forward implicitly requires
    # emb_size == hid_dim so that sent_len * emb_size == fc1.in_features.
    vocab_size = 64
    emb_size = 32
    hid_dim = 32
    class_num = 8
    sent_len = 8
    batch = 4

    key = jax.random.PRNGKey(0)
    k1, k2, k3, k4, k5, k6 = jax.random.split(key, 6)

    # nn.Embedding default init: N(0, 1)
    emb_table = jax.random.normal(k1, (vocab_size, emb_size), jnp.float32)

    # nn.Linear default init: U(-1/sqrt(in), 1/sqrt(in)); weights stored as (in, out)
    in1 = sent_len * emb_size
    lim1 = float(1.0 / (in1 ** 0.5))
    w1 = jax.random.uniform(k2, (in1, hid_dim), jnp.float32, -lim1, lim1)
    b1 = jax.random.uniform(k3, (hid_dim,), jnp.float32, -lim1, lim1)

    lim2 = float(1.0 / (hid_dim ** 0.5))
    w2 = jax.random.uniform(k4, (hid_dim, class_num), jnp.float32, -lim2, lim2)
    b2 = jax.random.uniform(k5, (class_num,), jnp.float32, -lim2, lim2)

    # Token ids: (sent_len, batch) int32, torch seq-first convention.
    ids = jax.random.randint(k6, (sent_len, batch), 0, vocab_size, dtype=jnp.int32)

    out = ann_forward(ids, emb_table, w1, b1, w2, b2)
    jax.block_until_ready(out)

    ref = ann_reference(ids, emb_table, w1, b1, w2, b2)
    assert out.shape == (batch, class_num)
    assert bool(jnp.all(jnp.isfinite(out)))
    assert bool(jnp.allclose(out, ref, atol=1e-2, rtol=1e-2)), "mismatch vs JAX reference"
    print("KERNEL_OK")
</pallas_src>

<mosaic_0001>
module attributes {stable_mosaic.version = 11 : i64} {
  func.func @ann_fused_kernel(%arg0: i32, %arg1: memref<8x8xi32, #tpu.memory_space<vmem>>, %arg2: memref<64x32xbf16, #tpu.memory_space<vmem>>, %arg3: memref<256x128xbf16, #tpu.memory_space<vmem>>, %arg4: memref<1x128xf32, #tpu.memory_space<vmem>>, %arg5: memref<128x128xbf16, #tpu.memory_space<vmem>>, %arg6: memref<1x128xf32, #tpu.memory_space<vmem>>, %arg7: memref<8x128xf32, #tpu.memory_space<vmem>>) attributes {dimension_semantics = [#tpu.dimension_semantics<parallel>], iteration_bounds = array<i64: 1>, scalar_prefetch = 0 : i64, scratch_operands = 0 : i64, tpu.core_type = #tpu.core_type<tc>, window_params = [{transform_indices = @transform_0, window_bounds = array<i64: 8, 8>}, {pipeline_mode = #tpu.pipeline_mode<synchronous>, transform_indices = @transform_1, window_bounds = array<i64: 64, 32>}, {pipeline_mode = #tpu.pipeline_mode<synchronous>, transform_indices = @transform_2, window_bounds = array<i64: 256, 128>}, {pipeline_mode = #tpu.pipeline_mode<synchronous>, transform_indices = @transform_3, window_bounds = array<i64: 1, 128>}, {pipeline_mode = #tpu.pipeline_mode<synchronous>, transform_indices = @transform_4, window_bounds = array<i64: 128, 128>}, {pipeline_mode = #tpu.pipeline_mode<synchronous>, transform_indices = @transform_5, window_bounds = array<i64: 1, 128>}, {transform_indices = @transform_6, window_bounds = array<i64: 8, 128>}]} {
    %c0 = arith.constant 0 : index
    %c0_0 = arith.constant 0 : index
    %0 = vector.load %arg1[%c0, %c0_0] : memref<8x8xi32, #tpu.memory_space<vmem>>, vector<8x8xi32>
    %c0_1 = arith.constant 0 : index
    %c0_2 = arith.constant 0 : index
    %1 = vector.load %arg2[%c0_1, %c0_2] : memref<64x32xbf16, #tpu.memory_space<vmem>>, vector<64x32xbf16>
    %2 = tpu.iota {dimensions = array<i32: 1>} : vector<8x64xi32>
    %cst = arith.constant 0.000000e+00 : f32
    %3 = vector.broadcast %cst : f32 to vector<8x128xf32>
    %4 = vector.extract_strided_slice %0 {offsets = [0, 0], sizes = [8, 1], strides = [1, 1]} : vector<8x8xi32> to vector<8x1xi32>
    %5 = vector.broadcast %4 : vector<8x1xi32> to vector<8x64xi32>
    %6 = arith.cmpi eq, %5, %2 : vector<8x64xi32>
    %7 = arith.extui %6 : vector<8x64xi1> to vector<8x64xi32>
    %8 = arith.sitofp %7 : vector<8x64xi32> to vector<8x64xf32>
    %9 = arith.truncf %8 : vector<8x64xf32> to vector<8x64xbf16>
    %cst_3 = arith.constant dense<0.000000e+00> : vector<8x32xf32>
    %10 = tpu.matmul %9, %1, %cst_3 {dimension_numbers = #tpu.dot_dimension_numbers<[1], [0], [0], [1], [0, 0, 1, 1], [], []>} : vector<8x64xbf16>, vector<64x32xbf16>, vector<8x32xf32> -> vector<8x32xf32>
    %11 = arith.truncf %10 : vector<8x32xf32> to vector<8x32xbf16>
    %c0_4 = arith.constant 0 : index
    %c0_5 = arith.constant 0 : index
    %12 = vector.load %arg3[%c0_4, %c0_5] : memref<256x128xbf16, #tpu.memory_space<vmem>>, vector<32x128xbf16>
    %cst_6 = arith.constant dense<0.000000e+00> : vector<8x128xf32>
    %13 = tpu.matmul %11, %12, %cst_6 {dimension_numbers = #tpu.dot_dimension_numbers<[1], [0], [0], [1], [0, 0, 1, 1], [], []>} : vector<8x32xbf16>, vector<32x128xbf16>, vector<8x128xf32> -> vector<8x128xf32>
    %14 = arith.addf %3, %13 : vector<8x128xf32>
    %15 = vector.extract_strided_slice %0 {offsets = [0, 1], sizes = [8, 1], strides = [1, 1]} : vector<8x8xi32> to vector<8x1xi32>
    %16 = vector.broadcast %15 : vector<8x1xi32> to vector<8x64xi32>
    %17 = arith.cmpi eq, %16, %2 : vector<8x64xi32>
    %18 = arith.extui %17 : vector<8x64xi1> to vector<8x64xi32>
    %19 = arith.sitofp %18 : vector<8x64xi32> to vector<8x64xf32>
    %20 = arith.truncf %19 : vector<8x64xf32> to vector<8x64xbf16>
    %cst_7 = arith.constant dense<0.000000e+00> : vector<8x32xf32>
    %21 = tpu.matmul %20, %1, %cst_7 {dimension_numbers = #tpu.dot_dimension_numbers<[1], [0], [0], [1], [0, 0, 1, 1], [], []>} : vector<8x64xbf16>, vector<64x32xbf16>, vector<8x32xf32> -> vector<8x32xf32>
    %22 = arith.truncf %21 : vector<8x32xf32> to vector<8x32xbf16>
    %c32 = arith.constant 32 : index
    %c0_8 = arith.constant 0 : index
    %23 = vector.load %arg3[%c32, %c0_8] : memref<256x128xbf16, #tpu.memory_space<vmem>>, vector<32x128xbf16>
    %cst_9 = arith.constant dense<0.000000e+00> : vector<8x128xf32>
    %24 = tpu.matmul %22, %23, %cst_9 {dimension_numbers = #tpu.dot_dimension_numbers<[1], [0], [0], [1], [0, 0, 1, 1], [], []>} : vector<8x32xbf16>, vector<32x128xbf16>, vector<8x128xf32> -> vector<8x128xf32>
    %25 = arith.addf %14, %24 : vector<8x128xf32>
    %26 = vector.extract_strided_slice %0 {offsets = [0, 2], sizes = [8, 1], strides = [1, 1]} : vector<8x8xi32> to vector<8x1xi32>
    %27 = vector.broadcast %26 : vector<8x1xi32> to vector<8x64xi32>
    %28 = arith.cmpi eq, %27, %2 : vector<8x64xi32>
    %29 = arith.extui %28 : vector<8x64xi1> to vector<8x64xi32>
    %30 = arith.sitofp %29 : vector<8x64xi32> to vector<8x64xf32>
    %31 = arith.truncf %30 : vector<8x64xf32> to vector<8x64xbf16>
    %cst_10 = arith.constant dense<0.000000e+00> : vector<8x32xf32>
    %32 = tpu.matmul %31, %1, %cst_10 {dimension_numbers = #tpu.dot_dimension_numbers<[1], [0], [0], [1], [0, 0, 1, 1], [], []>} : vector<8x64xbf16>, vector<64x32xbf16>, vector<8x32xf32> -> vector<8x32xf32>
    %33 = arith.truncf %32 : vector<8x32xf32> to vector<8x32xbf16>
    %c64 = arith.constant 64 : index
    %c0_11 = arith.constant 0 : index
    %34 = vector.load %arg3[%c64, %c0_11] : memref<256x128xbf16, #tpu.memory_space<vmem>>, vector<32x128xbf16>
    %cst_12 = arith.constant dense<0.000000e+00> : vector<8x128xf32>
    %35 = tpu.matmul %33, %34, %cst_12 {dimension_numbers = #tpu.dot_dimension_numbers<[1], [0], [0], [1], [0, 0, 1, 1], [], []>} : vector<8x32xbf16>, vector<32x128xbf16>, vector<8x128xf32> -> vector<8x128xf32>
    %36 = arith.addf %25, %35 : vector<8x128xf32>
    %37 = vector.extract_strided_slice %0 {offsets = [0, 3], sizes = [8, 1], strides = [1, 1]} : vector<8x8xi32> to vector<8x1xi32>
    %38 = vector.broadcast %37 : vector<8x1xi32> to vector<8x64xi32>
    %39 = arith.cmpi eq, %38, %2 : vector<8x64xi32>
    %40 = arith.extui %39 : vector<8x64xi1> to vector<8x64xi32>
    %41 = arith.sitofp %40 : vector<8x64xi32> to vector<8x64xf32>
    %42 = arith.truncf %41 : vector<8x64xf32> to vector<8x64xbf16>
    %cst_13 = arith.constant dense<0.000000e+00> : vector<8x32xf32>
    %43 = tpu.matmul %42, %1, %cst_13 {dimension_numbers = #tpu.dot_dimension_numbers<[1], [0], [0], [1], [0, 0, 1, 1], [], []>} : vector<8x64xbf16>, vector<64x32xbf16>, vector<8x32xf32> -> vector<8x32xf32>
    %44 = arith.truncf %43 : vector<8x32xf32> to vector<8x32xbf16>
    %c96 = arith.constant 96 : index
    %c0_14 = arith.constant 0 : index
    %45 = vector.load %arg3[%c96, %c0_14] : memref<256x128xbf16, #tpu.memory_space<vmem>>, vector<32x128xbf16>
    %cst_15 = arith.constant dense<0.000000e+00> : vector<8x128xf32>
    %46 = tpu.matmul %44, %45, %cst_15 {dimension_numbers = #tpu.dot_dimension_numbers<[1], [0], [0], [1], [0, 0, 1, 1], [], []>} : vector<8x32xbf16>, vector<32x128xbf16>, vector<8x128xf32> -> vector<8x128xf32>
    %47 = arith.addf %36, %46 : vector<8x128xf32>
    %48 = vector.extract_strided_slice %0 {offsets = [0, 4], sizes = [8, 1], strides = [1, 1]} : vector<8x8xi32> to vector<8x1xi32>
    %49 = vector.broadcast %48 : vector<8x1xi32> to vector<8x64xi32>
    %50 = arith.cmpi eq, %49, %2 : vector<8x64xi32>
    %51 = arith.extui %50 : vector<8x64xi1> to vector<8x64xi32>
    %52 = arith.sitofp %51 : vector<8x64xi32> to vector<8x64xf32>
    %53 = arith.truncf %52 : vector<8x64xf32> to vector<8x64xbf16>
    %cst_16 = arith.constant dense<0.000000e+00> : vector<8x32xf32>
    %54 = tpu.matmul %53, %1, %cst_16 {dimension_numbers = #tpu.dot_dimension_numbers<[1], [0], [0], [1], [0, 0, 1, 1], [], []>} : vector<8x64xbf16>, vector<64x32xbf16>, vector<8x32xf32> -> vector<8x32xf32>
    %55 = arith.truncf %54 : vector<8x32xf32> to vector<8x32xbf16>
    %c128 = arith.constant 128 : index
    %c0_17 = arith.constant 0 : index
    %56 = vector.load %arg3[%c128, %c0_17] : memref<256x128xbf16, #tpu.memory_space<vmem>>, vector<32x128xbf16>
    %cst_18 = arith.constant dense<0.000000e+00> : vector<8x128xf32>
    %57 = tpu.matmul %55, %56, %cst_18 {dimension_numbers = #tpu.dot_dimension_numbers<[1], [0], [0], [1], [0, 0, 1, 1], [], []>} : vector<8x32xbf16>, vector<32x128xbf16>, vector<8x128xf32> -> vector<8x128xf32>
    %58 = arith.addf %47, %57 : vector<8x128xf32>
    %59 = vector.extract_strided_slice %0 {offsets = [0, 5], sizes = [8, 1], strides = [1, 1]} : vector<8x8xi32> to vector<8x1xi32>
    %60 = vector.broadcast %59 : vector<8x1xi32> to vector<8x64xi32>
    %61 = arith.cmpi eq, %60, %2 : vector<8x64xi32>
    %62 = arith.extui %61 : vector<8x64xi1> to vector<8x64xi32>
    %63 = arith.sitofp %62 : vector<8x64xi32> to vector<8x64xf32>
    %64 = arith.truncf %63 : vector<8x64xf32> to vector<8x64xbf16>
    %cst_19 = arith.constant dense<0.000000e+00> : vector<8x32xf32>
    %65 = tpu.matmul %64, %1, %cst_19 {dimension_numbers = #tpu.dot_dimension_numbers<[1], [0], [0], [1], [0, 0, 1, 1], [], []>} : vector<8x64xbf16>, vector<64x32xbf16>, vector<8x32xf32> -> vector<8x32xf32>
    %66 = arith.truncf %65 : vector<8x32xf32> to vector<8x32xbf16>
    %c160 = arith.constant 160 : index
    %c0_20 = arith.constant 0 : index
    %67 = vector.load %arg3[%c160, %c0_20] : memref<256x128xbf16, #tpu.memory_space<vmem>>, vector<32x128xbf16>
    %cst_21 = arith.constant dense<0.000000e+00> : vector<8x128xf32>
    %68 = tpu.matmul %66, %67, %cst_21 {dimension_numbers = #tpu.dot_dimension_numbers<[1], [0], [0], [1], [0, 0, 1, 1], [], []>} : vector<8x32xbf16>, vector<32x128xbf16>, vector<8x128xf32> -> vector<8x128xf32>
    %69 = arith.addf %58, %68 : vector<8x128xf32>
    %70 = vector.extract_strided_slice %0 {offsets = [0, 6], sizes = [8, 1], strides = [1, 1]} : vector<8x8xi32> to vector<8x1xi32>
    %71 = vector.broadcast %70 : vector<8x1xi32> to vector<8x64xi32>
    %72 = arith.cmpi eq, %71, %2 : vector<8x64xi32>
    %73 = arith.extui %72 : vector<8x64xi1> to vector<8x64xi32>
    %74 = arith.sitofp %73 : vector<8x64xi32> to vector<8x64xf32>
    %75 = arith.truncf %74 : vector<8x64xf32> to vector<8x64xbf16>
    %cst_22 = arith.constant dense<0.000000e+00> : vector<8x32xf32>
    %76 = tpu.matmul %75, %1, %cst_22 {dimension_numbers = #tpu.dot_dimension_numbers<[1], [0], [0], [1], [0, 0, 1, 1], [], []>} : vector<8x64xbf16>, vector<64x32xbf16>, vector<8x32xf32> -> vector<8x32xf32>
    %77 = arith.truncf %76 : vector<8x32xf32> to vector<8x32xbf16>
    %c192 = arith.constant 192 : index
    %c0_23 = arith.constant 0 : index
    %78 = vector.load %arg3[%c192, %c0_23] : memref<256x128xbf16, #tpu.memory_space<vmem>>, vector<32x128xbf16>
    %cst_24 = arith.constant dense<0.000000e+00> : vector<8x128xf32>
    %79 = tpu.matmul %77, %78, %cst_24 {dimension_numbers = #tpu.dot_dimension_numbers<[1], [0], [0], [1], [0, 0, 1, 1], [], []>} : vector<8x32xbf16>, vector<32x128xbf16>, vector<8x128xf32> -> vector<8x128xf32>
    %80 = arith.addf %69, %79 : vector<8x128xf32>
    %81 = vector.extract_strided_slice %0 {offsets = [0, 7], sizes = [8, 1], strides = [1, 1]} : vector<8x8xi32> to vector<8x1xi32>
    %82 = vector.broadcast %81 : vector<8x1xi32> to vector<8x64xi32>
    %83 = arith.cmpi eq, %82, %2 : vector<8x64xi32>
    %84 = arith.extui %83 : vector<8x64xi1> to vector<8x64xi32>
    %85 = arith.sitofp %84 : vector<8x64xi32> to vector<8x64xf32>
    %86 = arith.truncf %85 : vector<8x64xf32> to vector<8x64xbf16>
    %cst_25 = arith.constant dense<0.000000e+00> : vector<8x32xf32>
    %87 = tpu.matmul %86, %1, %cst_25 {dimension_numbers = #tpu.dot_dimension_numbers<[1], [0], [0], [1], [0, 0, 1, 1], [], []>} : vector<8x64xbf16>, vector<64x32xbf16>, vector<8x32xf32> -> vector<8x32xf32>
    %88 = arith.truncf %87 : vector<8x32xf32> to vector<8x32xbf16>
    %c224 = arith.constant 224 : index
    %c0_26 = arith.constant 0 : index
    %89 = vector.load %arg3[%c224, %c0_26] : memref<256x128xbf16, #tpu.memory_space<vmem>>, vector<32x128xbf16>
    %cst_27 = arith.constant dense<0.000000e+00> : vector<8x128xf32>
    %90 = tpu.matmul %88, %89, %cst_27 {dimension_numbers = #tpu.dot_dimension_numbers<[1], [0], [0], [1], [0, 0, 1, 1], [], []>} : vector<8x32xbf16>, vector<32x128xbf16>, vector<8x128xf32> -> vector<8x128xf32>
    %91 = arith.addf %80, %90 : vector<8x128xf32>
    %c0_28 = arith.constant 0 : index
    %c0_29 = arith.constant 0 : index
    %92 = vector.load %arg4[%c0_28, %c0_29] : memref<1x128xf32, #tpu.memory_space<vmem>>, vector<1x128xf32>
    %93 = vector.broadcast %92 : vector<1x128xf32> to vector<8x128xf32>
    %94 = arith.addf %91, %93 : vector<8x128xf32>
    %95 = math.tanh %94 : vector<8x128xf32>
    %96 = arith.truncf %95 : vector<8x128xf32> to vector<8x128xbf16>
    %c0_30 = arith.constant 0 : index
    %c0_31 = arith.constant 0 : index
    %97 = vector.load %arg5[%c0_30, %c0_31] : memref<128x128xbf16, #tpu.memory_space<vmem>>, vector<128x128xbf16>
    %cst_32 = arith.constant dense<0.000000e+00> : vector<8x128xf32>
    %98 = tpu.matmul %96, %97, %cst_32 {dimension_numbers = #tpu.dot_dimension_numbers<[1], [0], [0], [1], [0, 0, 1, 1], [], []>} : vector<8x128xbf16>, vector<128x128xbf16>, vector<8x128xf32> -> vector<8x128xf32>
    %c0_33 = arith.constant 0 : index
    %c0_34 = arith.constant 0 : index
    %99 = vector.load %arg6[%c0_33, %c0_34] : memref<1x128xf32, #tpu.memory_space<vmem>>, vector<1x128xf32>
    %100 = vector.broadcast %99 : vector<1x128xf32> to vector<8x128xf32>
    %101 = arith.addf %98, %100 : vector<8x128xf32>
    %102 = math.tanh %101 : vector<8x128xf32>
    %c0_35 = arith.constant 0 : index
    %c0_36 = arith.constant 0 : index
    %103 = vector.load %arg7[%c0_35, %c0_36] : memref<8x128xf32, #tpu.memory_space<vmem>>, vector<8x128xf32>
    tpu.vector_store %arg7[%c0_35, %c0_36], %102 {strides = array<i32>} : memref<8x128xf32, #tpu.memory_space<vmem>>, vector<8x128xf32>,
    return
  }
  func.func @transform_0(%arg0: i32) -> (i32, i32) {
    %c0_i32 = arith.constant 0 : i32
    %c0_i32_0 = arith.constant 0 : i32
    return %arg0, %c0_i32 : i32, i32
  }
  func.func @transform_1(%arg0: i32) -> (i32, i32) {
    %c0_i32 = arith.constant 0 : i32
    %c0_i32_0 = arith.constant 0 : i32
    %c0_i32_1 = arith.constant 0 : i32
    return %c0_i32, %c0_i32_0 : i32, i32
  }
  func.func @transform_2(%arg0: i32) -> (i32, i32) {
    %c0_i32 = arith.constant 0 : i32
    %c0_i32_0 = arith.constant 0 : i32
    %c0_i32_1 = arith.constant 0 : i32
    return %c0_i32, %c0_i32_0 : i32, i32
  }
  func.func @transform_3(%arg0: i32) -> (i32, i32) {
    %c0_i32 = arith.constant 0 : i32
    %c0_i32_0 = arith.constant 0 : i32
    %c0_i32_1 = arith.constant 0 : i32
    return %c0_i32, %c0_i32_0 : i32, i32
  }
  func.func @transform_4(%arg0: i32) -> (i32, i32) {
    %c0_i32 = arith.constant 0 : i32
    %c0_i32_0 = arith.constant 0 : i32
    %c0_i32_1 = arith.constant 0 : i32
    return %c0_i32, %c0_i32_0 : i32, i32
  }
  func.func @transform_5(%arg0: i32) -> (i32, i32) {
    %c0_i32 = arith.constant 0 : i32
    %c0_i32_0 = arith.constant 0 : i32
    %c0_i32_1 = arith.constant 0 : i32
    return %c0_i32, %c0_i32_0 : i32, i32
  }
  func.func @transform_6(%arg0: i32) -> (i32, i32) {
    %c0_i32 = arith.constant 0 : i32
    %c0_i32_0 = arith.constant 0 : i32
    return %arg0, %c0_i32 : i32, i32
  }
}

</mosaic_0001>

<bundles_post_ra>
// kernel: tpu_custom_call.1
= control target key start
LH: loop header
LB: loop body
LE: loop exit
PB: predicated region body
PF: predicated region fallthrough
CT: control target
= control target key end

     0   :  { %11 = vsyncpa [#allocation3], 0  ;;  %s1798_s0 = inlined_call_operand.vmem [shape: s32[8,8], index: 0, kind: input, shape index: {}]   ;;  %s1799_s1 = inlined_call_operand.vmem [shape: bf16[64,32], index: 1, kind: input, shape index: {}]   ;;  %s1800_s2 = inlined_call_operand.hbm [shape: bf16[256,128], index: 2, kind: input, shape index: {}]   ;;  %s1801_s3 = inlined_call_operand.vmem [shape: f32[1,128], index: 3, kind: input, shape index: {}]   ;;  %s1802_s4 = inlined_call_operand.hbm [shape: bf16[128,128], index: 4, kind: input, shape index: {}]   ;;  %s1803_s5 = inlined_call_operand.vmem [shape: f32[1,128], index: 5, kind: input, shape index: {}]   ;;  %s1804_s6 = inlined_call_operand.hbm [shape: f32[8,128], index: 6, kind: output, shape index: {}]  }
   0x1   :  { %12 = vsyncpa [#allocation6], 0 }
   0x2   :  { %13 = vsyncpa [#allocation4], 0  ;;  %s1544_s21 = smov [#allocation2]  }
   0x3   :  { %s23_s22 = sshll.u32 %s1544_s21, 4  ;;  %s24_s22 = int_to_ptr.vmem [resolvable:$true] %s23_s22 }
   0x4   :  { %s1486_s23 = scalar_lea.vmem %s24_s22, 2048  ;;  %p1491_p1 = scmp.lt.s32.totalorder %s24_s22, %s24_s22 }
   0x5   :  { %p1487_p0 = scmp.ne.s32.totalorder %s24_s22, %s1486_s23  ;;  %p1492_p2 = scmp.lt.s32.totalorder %s1486_s23, %s1486_s23 }
   0x7   :  { %p1493_p3 = por %p1492_p2, %p1491_p1 }
   0x9   :  { %p1494_p4 = pnand %p1493_p3, %p1487_p0 }
   0xb   :  { %1497 = shalt.err (!%p1494_p4)
}
   0xc   :  { %s1545_s24 = smov 64   ;;  %s1546_s25 = smov 4  }
   0xd   :  { %29 = dma.hbm_to_vmem [thread:$0]  %s1800_s2, 2048, %s24_s22, [#allocation3], %s1545_s24, %s1545_s24, %s1546_s25  }
   0xe   :  { %s1547_s28 = smov [#allocation5]  }
   0xf   :  { %s37_s29 = sshll.u32 %s1547_s28, 4  ;;  %s38_s29 = int_to_ptr.vmem [resolvable:$true] %s37_s29 }
  0x10   :  { %s1506_s30 = scalar_lea.vmem %s38_s29, 1024  ;;  %p1511_p6 = scmp.lt.s32.totalorder %s38_s29, %s38_s29 }
  0x11   :  { %p1507_p5 = scmp.ne.s32.totalorder %s38_s29, %s1506_s30  ;;  %p1512_p7 = scmp.lt.s32.totalorder %s1506_s30, %s1506_s30 }
  0x13   :  { %p1513_p8 = por %p1512_p7, %p1511_p6 }
  0x15   :  { %p1514_p9 = pnand %p1513_p8, %p1507_p5 }
  0x17   :  { %1517 = shalt.err (!%p1514_p9)
}
  0x18   :  { %43 = dma.hbm_to_vmem [thread:$0]  %s1802_s4, 1024, %s38_s29, [#allocation6], %s1545_s24, %s1545_s24, %s1546_s25  }
  0x19   :  { %1538 = dma.done.wait [#allocation3], 2048  }
  0x1a   :  { %1539 = vsyncadd [#allocation3], 4294965248 }
  0x1b   :  { %1540 = dma.done.wait [#allocation6], 1024  }
  0x1c   :  { %1541 = vsyncadd [#allocation6], 4294966272  ;;  %v1548_v0 = vmov 0   ;;  %v1549_v1 = vmov 0.0   ;;  %v1605_v2 = vld [vmem:[%s1798_s0] sm:$0xff]  ;;  %vm1550_vm0 = vmmov 0   ;;  %v62_v9 = vlaneseq }
  0x1d   :  { %1437 = vset.pattern.permute.xlu0 %v1548_v0  ;;  %1242 = vmatprep.subr.bf16.mxu1 %v1549_v1  ;;  %v1615_v3 = vld [vmem:[%s1799_s1 + $0x18] sm:$0xff]   ;;  %v1621_v4 = vld [vmem:[%s1799_s1 + $0x10] sm:$0xff]   ;;  %v1551_v5 = vmov 1   ;;  %v1627_v6 = vld [vmem:[%s1799_s1 + $0x8] sm:$0xff]   ;;  %v1552_v8 = vmov 2   ;;  %vm95_vm2 = vcmask 523264  }
  0x1e   :  { %1266 = vmatprep.subr.bf16.mxu0 %v1549_v1  ;;  %1250 = vmatprep.mubr.msk.bf16.mxu1 %vm1550_vm0, %v1549_v1  ;;  %v1635_v7 = vld [vmem:[%s1799_s1] sm:$0xff]   ;;  %v1642_v10 = vand.u32 127, %v62_v9  ;;  %v1450_v17 = vld [vmem:[#allocation2 + $0x8] sm:$0xff]   ;;  %v1452_v19 = vld [vmem:[#allocation2 + $0x18] sm:$0xff]   ;;  %v1553_v21 = vmov 3   ;;  %vm211_vm4 = vcmask 261120  }
  0x1f   :  { %1270 = vmatprep.mubr.msk.bf16.mxu0 %vm1550_vm0, %v1549_v1  ;;  %65 = vperm.xlu0 %1437, %v1605_v2   ;;  %v1451_v18 = vld [vmem:[#allocation2] sm:$0xff]   ;;  %v1453_v20 = vld [vmem:[#allocation2 + $0x10] sm:$0xff]   ;;  %v1454_v35 = vld [vmem:[#allocation2 + $0x28] sm:$0xff]   ;;  %v1554_v37 = vmov 4   ;;  %v1555_v57 = vmov 5  }
  0x20   :  { %1243 = vmatpush3.bf16.msra.mxu1 %v1615_v3  ;;  %1439 = vset.pattern.permute.xlu1 %v1552_v8  ;;  %v1455_v36 = vld [vmem:[#allocation2 + $0x20] sm:$0xff]   ;;  %v1456_v55 = vld [vmem:[#allocation2 + $0x38] sm:$0xff]   ;;  %v1457_v56 = vld [vmem:[#allocation2 + $0x30] sm:$0xff]  }
  0x21   :  { %1244 = vmatprep.subr.bf16.mxu1 %v1549_v1  ;;  %311 = vperm.xlu1 %1439, %v1605_v2  }
  0x22   :  { %1267 = vmatpush3.bf16.msra.mxu0 %v1452_v19 }
  0x23   :  { %1438 = vset.pattern.permute.xlu0 %v1551_v5  ;;  %1268 = vmatprep.subr.bf16.mxu0 %v1549_v1 }
  0x24   :  { %145 = vperm.xlu0 %1438, %v1605_v2   ;;  %1245 = vmatpush3.bf16.msra.mxu1 %v1621_v4 }
  0x25   :  { %1246 = vmatprep.subr.bf16.mxu1 %v1549_v1  ;;  %1440 = vset.pattern.permute.xlu1 %v1553_v21 }
  0x26   :  { %1269 = vmatpush3.bf16.msra.mxu0 %v1453_v20  ;;  %422 = vperm.xlu1 %1440, %v1605_v2  }
  0x27   :  { %1282 = vmatprep.subr.bf16.mxu0 %v1549_v1 }
  0x28   :  { %1247 = vmatpush3.bf16.msra.mxu1 %v1627_v6  ;;  %1442 = vset.pattern.permute.xlu0 %v1555_v57 }
  0x29   :  { %1248 = vmatprep.subr.bf16.mxu1 %v1549_v1  ;;  %644 = vperm.xlu0 %1442, %v1605_v2  }
  0x2a   :  { %1441 = vset.pattern.permute.xlu1 %v1554_v37 }
  0x2b   :  { %533 = vperm.xlu1 %1441, %v1605_v2  }
  0x2c   :  { %1249 = vmatpush3.bf16.msra.mxu1 %v1635_v7 }
  0x2d   :  { %1254 = vmatprep.subr.bf16.mxu1 %v1549_v1 }
  0x9a   :  { %v66_v11 = vpop.permute.xlu0 %65 }
  0x9b   :  { %vm67_vm1 = vcmp.eq.s32.totalorder %v66_v11, %v1642_v10 }
  0x9c   :  { %v1115_v12 = vsel %vm67_vm1, 1.0, %v1549_v1  ;;  %v312_v32 = vpop.permute.xlu1 %311 }
  0x9d   :  { %v70_v13 = vpack.c.bf16 %v1115_v12, %v1115_v12  ;;  %vm313_vm5 = vcmp.eq.s32.totalorder %v312_v32, %v1642_v10  ;;  %v1557_v32 = vmov 7  }
  0x9e   :  { %v1129_v33 = vsel %vm313_vm5, 1.0, %v1549_v1  ;;  %1445 = vset.pattern.permute.xlu0 %v1557_v32 }
  0x9f   :  { %1251 = vmatmul.mubr.msk.bf16.vlgmr.msra.gmra.mxu1 %vm95_vm2, %v70_v13  ;;  %v146_v14 = vpop.permute.xlu0 %145  ;;  %v316_v34 = vpack.c.bf16 %v1129_v33, %v1129_v33 }
  0xa0   :  { %1255 = vmatpush3.bf16.msra.mxu1 %v1615_v3  ;;  %1262 = vmatprep.mubr.msk.bf16.mxu1 %vm1550_vm0, %v1549_v1  ;;  %vm147_vm3 = vcmp.eq.s32.totalorder %v146_v14, %v1642_v10  ;;  %v1458_v14 = vld [vmem:[#allocation2 + $0x48] sm:$0xff]  }
  0xa1   :  { %1256 = vmatprep.subr.bf16.mxu1 %v1549_v1  ;;  %v1121_v15 = vsel %vm147_vm3, 1.0, %v1549_v1  ;;  %v423_v52 = vpop.permute.xlu1 %422 }
  0xa2   :  { %v150_v16 = vpack.c.bf16 %v1121_v15, %v1121_v15  ;;  %vm424_vm6 = vcmp.eq.s32.totalorder %v423_v52, %v1642_v10  ;;  %v1459_v15 = vld [vmem:[#allocation2 + $0x40] sm:$0xff]  }
  0xa3   :  { %v1134_v53 = vsel %vm424_vm6, 1.0, %v1549_v1 }
  0xa4   :  { %1257 = vmatpush3.bf16.msra.mxu1 %v1621_v4  ;;  %v427_v54 = vpack.c.bf16 %v1134_v53, %v1134_v53 }
  0xa5   :  { %1258 = vmatprep.subr.bf16.mxu1 %v1549_v1 }
  0xa6   :  { %v534_v11 = vpop.permute.xlu1 %533 }
  0xa7   :  { %vm535_vm7 = vcmp.eq.s32.totalorder %v534_v11, %v1642_v10 }
  0xa8   :  { %1259 = vmatpush3.bf16.msra.mxu1 %v1627_v6  ;;  %v1139_v12 = vsel %vm535_vm7, 1.0, %v1549_v1 }
  0xa9   :  { %1260 = vmatprep.subr.bf16.mxu1 %v1549_v1  ;;  %v538_v13 = vpack.c.bf16 %v1139_v12, %v1139_v12  ;;  %v1468_v12 = vld [vmem:[#allocation5 + $0x28] sm:$0xff]  }
  0xac   :  { %1261 = vmatpush3.bf16.msra.mxu1 %v1635_v7 }
  0xad   :  { %1274 = vmatprep.subr.bf16.mxu1 %v1549_v1 }
  0xaf   :  { %1263 = vmatmul.mubr.msk.bf16.vlgmr.msra.gmra.mxu1 %vm95_vm2, %v150_v16  ;;  %v1556_v16 = vmov 6  }
  0xb0   :  { %1275 = vmatpush3.bf16.msra.mxu1 %v1450_v17  ;;  %1278 = vmatprep.mubr.msk.bf16.mxu1 %vm1550_vm0, %v1549_v1 }
  0xb1   :  { %1276 = vmatprep.subr.bf16.mxu1 %v1549_v1  ;;  %1443 = vset.pattern.permute.xlu1 %v1556_v16  ;;  %v1472_v16 = vld [vmem:[#allocation5 + $0x8] sm:$0xff]  }
  0xb2   :  { %755 = vperm.xlu1 %1443, %v1605_v2  }
  0xb4   :  { %1277 = vmatpush3.bf16.msra.mxu1 %v1451_v18 }
  0xb5   :  { %1294 = vmatprep.subr.bf16.mxu1 %v1549_v1 }
  0xb6   :  { %1444 = vset.pattern.permute.xlu1 %v1557_v32 }
  0xb7   :  { %866 = vperm.xlu1 %1444, %v1605_v2  }
 0x12d   :  { %v756_v2 = vpop.permute.xlu1 %755 }
 0x12e   :  { %vm757_vm9 = vcmp.eq.s32.totalorder %v756_v2, %v1642_v10 }
 0x132   :  { %v867_v57 = vpop.permute.xlu1 %866 }
 0x133   :  { %vm868_vm10 = vcmp.eq.s32.totalorder %v867_v57, %v1642_v10 }
 0x15f   :  { %v133_v22 = vpop.f32.mrf.mxu1 }
 0x160   :  { %v139_v23 = vpack.c.bf16 %v133_v22, %v133_v22 }
 0x161   :  { %v1252_v24 = vpop.f32.mrf.mxu1 }
 0x162   :  { %1279 = vmatmul.mubr.msk.bf16.vlgmr.msra.gmra.mxu1 %vm211_vm4, %v139_v23 }
 0x163   :  { %v136_v25 = vpop.f32.mrf.mxu1  ;;  %1298 = vmatprep.mubr.msk.bf16.mxu1 %vm1550_vm0, %v1549_v1  ;;  %1295 = vmatpush3.bf16.msra.mxu1 %v1454_v35 }
 0x164   :  { %1296 = vmatprep.subr.bf16.mxu1 %v1549_v1 }
 0x165   :  { %v1253_v26 = vpop.f32.mrf.mxu1 }
 0x167   :  { %1297 = vmatpush3.bf16.msra.mxu1 %v1455_v36 }
 0x168   :  { %1302 = vmatprep.subr.bf16.mxu1 %v1549_v1 }
 0x16f   :  { %v188_v27 = vpop.f32.mrf.mxu1 }
 0x170   :  { %v194_v28 = vpack.c.bf16 %v188_v27, %v188_v27  ;;  %v645_v27 = vpop.permute.xlu0 %644 }
 0x171   :  { %v1264_v29 = vpop.f32.mrf.mxu1  ;;  %vm646_vm8 = vcmp.eq.s32.totalorder %v645_v27, %v1642_v10 }
 0x172   :  { %1271 = vmatmul.mubr.msk.bf16.vlgmr.msra.gmra.mxu0 %vm211_vm4, %v194_v28  ;;  %v1144_v28 = vsel %vm646_vm8, 1.0, %v1549_v1 }
 0x173   :  { %1283 = vmatpush3.bf16.msra.mxu0 %v1615_v3  ;;  %v191_v30 = vpop.f32.mrf.mxu1  ;;  %1290 = vmatprep.mubr.msk.bf16.mxu0 %vm1550_vm0, %v1549_v1  ;;  %v649_v29 = vpack.c.bf16 %v1144_v28, %v1144_v28 }
 0x174   :  { %1284 = vmatprep.subr.bf16.mxu0 %v1549_v1  ;;  %v1460_v30 = vld [vmem:[#allocation2 + $0x58] sm:$0xff]  }
 0x175   :  { %v1265_v31 = vpop.f32.mrf.mxu1 }
 0x176   :  { %v1461_v31 = vld [vmem:[#allocation2 + $0x50] sm:$0xff]  }
 0x177   :  { %1285 = vmatpush3.bf16.msra.mxu0 %v1621_v4 }
 0x178   :  { %1286 = vmatprep.subr.bf16.mxu0 %v1549_v1 }
 0x17b   :  { %1287 = vmatpush3.bf16.msra.mxu0 %v1627_v6 }
 0x17c   :  { %1288 = vmatprep.subr.bf16.mxu0 %v1549_v1 }
 0x17f   :  { %1289 = vmatpush3.bf16.msra.mxu0 %v1635_v7 }
 0x180   :  { %1314 = vmatprep.subr.bf16.mxu0 %v1549_v1 }
 0x182   :  { %1291 = vmatmul.mubr.msk.bf16.vlgmr.msra.gmra.mxu0 %vm95_vm2, %v316_v34 }
 0x183   :  { %1318 = vmatprep.mubr.msk.bf16.mxu0 %vm1550_vm0, %v1549_v1  ;;  %1315 = vmatpush3.bf16.msra.mxu0 %v1456_v55 }
 0x184   :  { %1316 = vmatprep.subr.bf16.mxu0 %v1549_v1 }
 0x187   :  { %1317 = vmatpush3.bf16.msra.mxu0 %v1457_v56 }
 0x188   :  { %1322 = vmatprep.subr.bf16.mxu0 %v1549_v1 }
 0x222   :  { %v304_v38 = vpop.f32.mrf.mxu1 }
 0x224   :  { %v1280_v39 = vpop.f32.mrf.mxu1 }
 0x226   :  { %v307_v40 = vpop.f32.mrf.mxu1 }
 0x228   :  { %v1281_v41 = vpop.f32.mrf.mxu1 }
 0x232   :  { %v249_v42 = vpop.f32.mrf.mxu0 }
 0x233   :  { %v305_v43 = vadd.f32 %v304_v38, %v249_v42 }
 0x234   :  { %v1272_v44 = vpop.f32.mrf.mxu0 }
 0x236   :  { %v252_v45 = vpop.f32.mrf.mxu0 }
 0x237   :  { %v1462_v45 = vld [vmem:[#allocation2 + $0x68] sm:$0xff]  }
 0x238   :  { %v1273_v46 = vpop.f32.mrf.mxu0 }
 0x239   :  { %v1463_v46 = vld [vmem:[#allocation2 + $0x60] sm:$0xff]  }
 0x242   :  { %v354_v47 = vpop.f32.mrf.mxu0 }
 0x243   :  { %v360_v48 = vpack.c.bf16 %v354_v47, %v354_v47 }
 0x244   :  { %v1292_v49 = vpop.f32.mrf.mxu0 }
 0x245   :  { %1299 = vmatmul.mubr.msk.bf16.vlgmr.msra.gmra.mxu1 %vm211_vm4, %v360_v48 }
 0x246   :  { %1303 = vmatpush3.bf16.msra.mxu1 %v1615_v3  ;;  %v357_v50 = vpop.f32.mrf.mxu0  ;;  %1310 = vmatprep.mubr.msk.bf16.mxu1 %vm1550_vm0, %v1549_v1 }
 0x247   :  { %1304 = vmatprep.subr.bf16.mxu1 %v1549_v1 }
 0x248   :  { %v1293_v51 = vpop.f32.mrf.mxu0 }
 0x24a   :  { %1305 = vmatpush3.bf16.msra.mxu1 %v1621_v4 }
 0x24b   :  { %1306 = vmatprep.subr.bf16.mxu1 %v1549_v1 }
 0x24e   :  { %1307 = vmatpush3.bf16.msra.mxu1 %v1627_v6 }
 0x24f   :  { %1308 = vmatprep.subr.bf16.mxu1 %v1549_v1 }
 0x252   :  { %1309 = vmatpush3.bf16.msra.mxu1 %v1635_v7 }
 0x253   :  { %1334 = vmatprep.subr.bf16.mxu1 %v1549_v1 }
 0x255   :  { %1311 = vmatmul.mubr.msk.bf16.vlgmr.msra.gmra.mxu1 %vm95_vm2, %v427_v54 }
 0x256   :  { %1338 = vmatprep.mubr.msk.bf16.mxu1 %vm1550_vm0, %v1549_v1  ;;  %1335 = vmatpush3.bf16.msra.mxu1 %v1458_v14  ;;  %v1470_v14 = vld [vmem:[#allocation5 + $0x18] sm:$0xff]  }
 0x257   :  { %1336 = vmatprep.subr.bf16.mxu1 %v1549_v1 }
 0x25a   :  { %1337 = vmatpush3.bf16.msra.mxu1 %v1459_v15  ;;  %v1471_v15 = vld [vmem:[#allocation5 + $0x10] sm:$0xff]  }
 0x25b   :  { %1342 = vmatprep.subr.bf16.mxu1 %v1549_v1 }
 0x305   :  { %v414_v58 = vpop.f32.mrf.mxu1 }
 0x306   :  { %v420_v59 = vadd.f32 %v414_v58, %v305_v43  ;;  %v1149_v43 = vsel %vm757_vm9, 1.0, %v1549_v1  ;;  %v1154_v58 = vsel %vm868_vm10, 1.0, %v1549_v1 }
 0x307   :  { %v1300_v60 = vpop.f32.mrf.mxu1  ;;  %v760_v44 = vpack.c.bf16 %v1149_v43, %v1149_v43 }
 0x308   :  { %v1465_v60 = vld [vmem:[#allocation2 + $0x70] sm:$0xff]  }
 0x309   :  { %v417_v61 = vpop.f32.mrf.mxu1 }
 0x30b   :  { %v1301_v62 = vpop.f32.mrf.mxu1 }
 0x315   :  { %v465_v63 = vpop.f32.mrf.mxu1 }
 0x316   :  { %v471_v0 = vpack.c.bf16 %v465_v63, %v465_v63 }
 0x317   :  { %v1312_v5 = vpop.f32.mrf.mxu1 }
 0x318   :  { %1319 = vmatmul.mubr.msk.bf16.vlgmr.msra.gmra.mxu0 %vm211_vm4, %v471_v0  ;;  %v1466_v0 = vld [vmem:[#allocation5 + $0x38] sm:$0xff]  }
 0x319   :  { %1323 = vmatpush3.bf16.msra.mxu0 %v1615_v3  ;;  %v468_v8 = vpop.f32.mrf.mxu1  ;;  %1330 = vmatprep.mubr.msk.bf16.mxu0 %vm1550_vm0, %v1549_v1 }
 0x31a   :  { %1324 = vmatprep.subr.bf16.mxu0 %v1549_v1 }
 0x31b   :  { %v1313_v9 = vpop.f32.mrf.mxu1 }
 0x31c   :  { %v1467_v9 = vld [vmem:[#allocation5 + $0x30] sm:$0xff]  }
 0x31d   :  { %1325 = vmatpush3.bf16.msra.mxu0 %v1621_v4 }
 0x31e   :  { %1326 = vmatprep.subr.bf16.mxu0 %v1549_v1 }
 0x321   :  { %1327 = vmatpush3.bf16.msra.mxu0 %v1627_v6 }
 0x322   :  { %1328 = vmatprep.subr.bf16.mxu0 %v1549_v1 }
 0x325   :  { %1329 = vmatpush3.bf16.msra.mxu0 %v1635_v7 }
 0x326   :  { %1354 = vmatprep.subr.bf16.mxu0 %v1549_v1 }
 0x328   :  { %1331 = vmatmul.mubr.msk.bf16.vlgmr.msra.gmra.mxu0 %vm95_vm2, %v538_v13  ;;  %v1469_v13 = vld [vmem:[#allocation5 + $0x20] sm:$0xff]  }
 0x329   :  { %1358 = vmatprep.mubr.msk.bf16.mxu0 %vm1550_vm0, %v1549_v1  ;;  %1355 = vmatpush3.bf16.msra.mxu0 %v1460_v30 }
 0x32a   :  { %1356 = vmatprep.subr.bf16.mxu0 %v1549_v1 }
 0x32d   :  { %1357 = vmatpush3.bf16.msra.mxu0 %v1461_v31 }
 0x32e   :  { %1362 = vmatprep.subr.bf16.mxu0 %v1549_v1 }
 0x3d8   :  { %v525_v17 = vpop.f32.mrf.mxu0 }
 0x3d9   :  { %v531_v18 = vadd.f32 %v525_v17, %v420_v59  ;;  %v1464_v59 = vld [vmem:[#allocation2 + $0x78] sm:$0xff]   ;;  %v1473_v17 = vld [vmem:[#allocation5] sm:$0xff]  }
 0x3da   :  { %v1320_v19 = vpop.f32.mrf.mxu0 }
 0x3db   :  { %v1159_v19 = vld [vmem:[%s1801_s3] ss:$0 sm:$0xff]  ;;  %s1558_s3 = smov [#allocation7]  }
 0x3dc   :  { %v528_v20 = vpop.f32.mrf.mxu0  ;;  %s1105_s19 = sshll.u32 %s1558_s3, 4  ;;  %s1106_s19 = int_to_ptr.vmem [resolvable:$true] %s1105_s19 }
 0x3dd   :  { %s1518_s20 = scalar_lea.vmem %s1106_s19, 128  ;;  %p1523_p11 = scmp.lt.s32.totalorder %s1106_s19, %s1106_s19 }
 0x3de   :  { %v1321_v21 = vpop.f32.mrf.mxu0  ;;  %p1519_p10 = scmp.ne.s32.totalorder %s1106_s19, %s1518_s20  ;;  %p1524_p12 = scmp.lt.s32.totalorder %s1518_s20, %s1518_s20 }
 0x3e0   :  { %p1525_p13 = por %p1524_p12, %p1523_p11 }
 0x3e2   :  { %p1526_p0 = pnand %p1525_p13, %p1519_p10 }
 0x3e8   :  { %v576_v22 = vpop.f32.mrf.mxu0 }
 0x3e9   :  { %v582_v23 = vpack.c.bf16 %v576_v22, %v576_v22 }
 0x3ea   :  { %v1332_v24 = vpop.f32.mrf.mxu0 }
 0x3eb   :  { %1339 = vmatmul.mubr.msk.bf16.vlgmr.msra.gmra.mxu1 %vm211_vm4, %v582_v23 }
 0x3ec   :  { %1343 = vmatpush3.bf16.msra.mxu1 %v1615_v3  ;;  %v579_v25 = vpop.f32.mrf.mxu0  ;;  %1350 = vmatprep.mubr.msk.bf16.mxu1 %vm1550_vm0, %v1549_v1 }
 0x3ed   :  { %1344 = vmatprep.subr.bf16.mxu1 %v1549_v1 }
 0x3ee   :  { %v1333_v26 = vpop.f32.mrf.mxu0 }
 0x3f0   :  { %1345 = vmatpush3.bf16.msra.mxu1 %v1621_v4 }
 0x3f1   :  { %1346 = vmatprep.subr.bf16.mxu1 %v1549_v1 }
 0x3f4   :  { %1347 = vmatpush3.bf16.msra.mxu1 %v1627_v6 }
 0x3f5   :  { %1348 = vmatprep.subr.bf16.mxu1 %v1549_v1 }
 0x3f8   :  { %1349 = vmatpush3.bf16.msra.mxu1 %v1635_v7 }
 0x3f9   :  { %1374 = vmatprep.subr.bf16.mxu1 %v1549_v1 }
 0x3fb   :  { %1351 = vmatmul.mubr.msk.bf16.vlgmr.msra.gmra.mxu1 %vm95_vm2, %v649_v29 }
 0x3fc   :  { %1378 = vmatprep.mubr.msk.bf16.mxu1 %vm1550_vm0, %v1549_v1  ;;  %1375 = vmatpush3.bf16.msra.mxu1 %v1462_v45 }
 0x3fd   :  { %1376 = vmatprep.subr.bf16.mxu1 %v1549_v1 }
 0x400   :  { %1377 = vmatpush3.bf16.msra.mxu1 %v1463_v46 }
 0x401   :  { %1382 = vmatprep.subr.bf16.mxu1 %v1549_v1 }
 0x4ab   :  { %v636_v33 = vpop.f32.mrf.mxu1 }
 0x4ac   :  { %v642_v34 = vadd.f32 %v636_v33, %v531_v18 }
 0x4ad   :  { %v1340_v35 = vpop.f32.mrf.mxu1 }
 0x4af   :  { %v639_v36 = vpop.f32.mrf.mxu1 }
 0x4b1   :  { %v1341_v37 = vpop.f32.mrf.mxu1 }
 0x4bb   :  { %v687_v38 = vpop.f32.mrf.mxu1 }
 0x4bc   :  { %v693_v39 = vpack.c.bf16 %v687_v38, %v687_v38 }
 0x4bd   :  { %v1352_v40 = vpop.f32.mrf.mxu1 }
 0x4be   :  { %1359 = vmatmul.mubr.msk.bf16.vlgmr.msra.gmra.mxu0 %vm211_vm4, %v693_v39 }
 0x4bf   :  { %1363 = vmatpush3.bf16.msra.mxu0 %v1615_v3  ;;  %v690_v41 = vpop.f32.mrf.mxu1  ;;  %1370 = vmatprep.mubr.msk.bf16.mxu0 %vm1550_vm0, %v1549_v1 }
 0x4c0   :  { %1364 = vmatprep.subr.bf16.mxu0 %v1549_v1 }
 0x4c1   :  { %v1353_v42 = vpop.f32.mrf.mxu1 }
 0x4c3   :  { %1365 = vmatpush3.bf16.msra.mxu0 %v1621_v4 }
 0x4c4   :  { %1366 = vmatprep.subr.bf16.mxu0 %v1549_v1 }
 0x4c7   :  { %1367 = vmatpush3.bf16.msra.mxu0 %v1627_v6 }
 0x4c8   :  { %1368 = vmatprep.subr.bf16.mxu0 %v1549_v1 }
 0x4cb   :  { %1369 = vmatpush3.bf16.msra.mxu0 %v1635_v7 }
 0x4cc   :  { %1394 = vmatprep.subr.bf16.mxu0 %v1549_v1 }
 0x4ce   :  { %1371 = vmatmul.mubr.msk.bf16.vlgmr.msra.gmra.mxu0 %vm95_vm2, %v760_v44 }
 0x4cf   :  { %1398 = vmatprep.mubr.msk.bf16.mxu0 %vm1550_vm0, %v1549_v1  ;;  %1395 = vmatpush3.bf16.msra.mxu0 %v1464_v59 }
 0x4d0   :  { %1396 = vmatprep.subr.bf16.mxu0 %v1549_v1 }
 0x4d3   :  { %1397 = vmatpush3.bf16.msra.mxu0 %v1465_v60 }
 0x4d4   :  { %1402 = vmatprep.subr.bf16.mxu0 %v1549_v1 }
 0x57e   :  { %v747_v47 = vpop.f32.mrf.mxu0 }
 0x57f   :  { %v753_v48 = vadd.f32 %v747_v47, %v642_v34 }
 0x580   :  { %v1360_v49 = vpop.f32.mrf.mxu0 }
 0x582   :  { %v750_v50 = vpop.f32.mrf.mxu0 }
 0x584   :  { %v1361_v51 = vpop.f32.mrf.mxu0 }
 0x58e   :  { %v798_v52 = vpop.f32.mrf.mxu0 }
 0x58f   :  { %v804_v53 = vpack.c.bf16 %v798_v52, %v798_v52 }
 0x590   :  { %v1372_v54 = vpop.f32.mrf.mxu0 }
 0x591   :  { %1379 = vmatmul.mubr.msk.bf16.vlgmr.msra.gmra.mxu1 %vm211_vm4, %v804_v53 }
 0x592   :  { %1383 = vmatpush3.bf16.msra.mxu1 %v1615_v3  ;;  %v801_v55 = vpop.f32.mrf.mxu0  ;;  %1390 = vmatprep.mubr.msk.bf16.mxu1 %vm1550_vm0, %v1549_v1  ;;  %v871_v3 = vpack.c.bf16 %v1154_v58, %v1154_v58 }
 0x593   :  { %1384 = vmatprep.subr.bf16.mxu1 %v1549_v1 }
 0x594   :  { %v1373_v56 = vpop.f32.mrf.mxu0 }
 0x596   :  { %1385 = vmatpush3.bf16.msra.mxu1 %v1621_v4 }
 0x597   :  { %1386 = vmatprep.subr.bf16.mxu1 %v1549_v1 }
 0x59a   :  { %1387 = vmatpush3.bf16.msra.mxu1 %v1627_v6 }
 0x59b   :  { %1388 = vmatprep.subr.bf16.mxu1 %v1549_v1 }
 0x59e   :  { %1389 = vmatpush3.bf16.msra.mxu1 %v1635_v7 }
 0x5a1   :  { %1391 = vmatmul.mubr.msk.bf16.vlgmr.msra.gmra.mxu1 %vm95_vm2, %v871_v3 }
 0x651   :  { %v858_v4 = vpop.f32.mrf.mxu1 }
 0x652   :  { %v864_v10 = vadd.f32 %v858_v4, %v753_v48 }
 0x653   :  { %v1380_v6 = vpop.f32.mrf.mxu1 }
 0x655   :  { %v861_v61 = vpop.f32.mrf.mxu1 }
 0x657   :  { %v1381_v62 = vpop.f32.mrf.mxu1 }
 0x661   :  { %v909_v63 = vpop.f32.mrf.mxu1 }
 0x662   :  { %v915_v5 = vpack.c.bf16 %v909_v63, %v909_v63 }
 0x663   :  { %v1392_v8 = vpop.f32.mrf.mxu1 }
 0x664   :  { %1399 = vmatmul.mubr.msk.bf16.vlgmr.msra.gmra.mxu0 %vm211_vm4, %v915_v5 }
 0x665   :  { %v912_v7 = vpop.f32.mrf.mxu1  ;;  %1403 = vmatpush3.bf16.msra.mxu0 %v1466_v0  ;;  %1418 = vmatprep.mubr.msk.bf16.mxu0 %vm1550_vm0, %v1549_v1 }
 0x666   :  { %1404 = vmatprep.subr.bf16.mxu0 %v1549_v1 }
 0x667   :  { %v1393_v11 = vpop.f32.mrf.mxu1 }
 0x669   :  { %1405 = vmatpush3.bf16.msra.mxu0 %v1467_v9 }
 0x66a   :  { %1406 = vmatprep.subr.bf16.mxu0 %v1549_v1 }
 0x66d   :  { %1407 = vmatpush3.bf16.msra.mxu0 %v1468_v12 }
 0x66e   :  { %1408 = vmatprep.subr.bf16.mxu0 %v1549_v1 }
 0x671   :  { %1409 = vmatpush3.bf16.msra.mxu0 %v1469_v13 }
 0x672   :  { %1410 = vmatprep.subr.bf16.mxu0 %v1549_v1 }
 0x675   :  { %1411 = vmatpush3.bf16.msra.mxu0 %v1470_v14 }
 0x676   :  { %1412 = vmatprep.subr.bf16.mxu0 %v1549_v1 }
 0x679   :  { %1413 = vmatpush3.bf16.msra.mxu0 %v1471_v15 }
 0x67a   :  { %1414 = vmatprep.subr.bf16.mxu0 %v1549_v1 }
 0x67d   :  { %1415 = vmatpush3.bf16.msra.mxu0 %v1472_v16 }
 0x67e   :  { %1416 = vmatprep.subr.bf16.mxu0 %v1549_v1  ;;  %v1160_v1 = vld [vmem:[%s1803_s5] ss:$0 sm:$0xff] }
 0x681   :  { %1417 = vmatpush3.bf16.msra.mxu0 %v1473_v17 }
 0x724   :  { %v969_v18 = vpop.f32.mrf.mxu0 }
 0x725   :  { %v975_v20 = vadd.f32 %v969_v18, %v864_v10 }
 0x726   :  { %v1400_v21 = vpop.f32.mrf.mxu0 }
 0x727   :  { %v983_v22 = vadd.f32 %v1159_v19, %v975_v20 }
 0x728   :  { %v972_v23 = vpop.f32.mrf.mxu0 }
 0x729   :  { %1474 = vtanh.f32 %v983_v22 }
 0x72a   :  { %v1401_v24 = vpop.f32.mrf.mxu0 }
 0x736   :  { %v1475_v25 = vpop.eup %1474 }
 0x737   :  { %v985_v26 = vpack.c.bf16 %v1475_v25, %v1475_v25 }
 0x739   :  { %1419 = vmatmul.mubr.bf16.vlgmr.msra.gmra.mxu0 %v985_v26 }
 0x7f9   :  { %v1091_v27 = vpop.f32.mrf.mxu0 }
 0x7fa   :  { %v1092_v28 = vadd.f32 %v1160_v1, %v1091_v27 }
 0x7fb   :  { %v1420_v29 = vpop.f32.mrf.mxu0 }
 0x7fc   :  { %1476 = vtanh.f32 %v1092_v28 }
 0x7fd   :  { %v1094_v30 = vpop.f32.mrf.mxu0 }
 0x7ff   :  { %v1421_v31 = vpop.f32.mrf.mxu0 }
 0x809   :  { %v1477_v32 = vpop.eup %1476 }
 0x80a   :  { %1098 = vst [vmem:[#allocation7] sm:$0xff] %v1477_v32 }
 0x80b   :  { %1529 = shalt.err (!%p1526_p0)
}
 0x80c   :  { %1108 = dma.vmem_to_hbm [thread:$0]  %s1106_s19, 128, %s1804_s6, [#allocation4]  }
 0x80d   :  { %1542 = dma.done.wait [#allocation4], 128  }
 0x80e   :  { %1543 = vsyncadd [#allocation4], 4294967168 }
 0x80f   :  { %1112 = vsyncpa [#allocation3], 1 }
 0x810   :  { %1113 = vsyncpa [#allocation6], 1 }
 0x811   :  { %1114 = vsyncpa [#allocation4], 1 }

</bundles_post_ra>
